<compile_context>
chip_gen: v6e
topology: v6e:2x2x1
jax: 0.10.0
libtpu: 0.0.40
codegen_flags: <defaults>
</compile_context>

<pallas_src>
import jax
import jax.numpy as jnp
from jax.experimental import pallas as pl
from jax.experimental.pallas import tpu as pltpu

# TODO(synk): Config.DROPOUT_RATIO is not given in the source snippet; fixed here.
DROPOUT_RATIO = 0.5
BN_EPS = 1e-5
# keep iff random uint32 >= threshold  =>  P(keep) = 1 - p
_DROP_THRESHOLD = min(int(round(DROPOUT_RATIO * (1 << 32))), (1 << 32) - 1)
_INV_KEEP = 1.0 / (1.0 - DROPOUT_RATIO)


def _bn_relu_dropout(h, gamma, beta, bits):
    # h: (F, N); gamma/beta: (F, 1); bits: (F, N) uint32.
    # Training-mode BatchNorm1d (per-feature mean / biased variance over the batch,
    # which is the lane axis here), folded with the dropout 1/(1-p) into one
    # scale/shift; rsqrt goes to the EUP slot.
    mean = jnp.mean(h, axis=1, keepdims=True)
    hm = h - mean
    var = jnp.mean(hm * hm, axis=1, keepdims=True)
    scale = gamma * jax.lax.rsqrt(var + BN_EPS) * _INV_KEEP
    shift = beta * _INV_KEEP
    act = jnp.maximum(hm * scale + shift, 0.0)           # ReLU (positive 1/(1-p) commutes)
    keep = bits >= jnp.uint32(_DROP_THRESHOLD)            # threshold test on raw bits
    return jnp.where(keep, act, 0.0)


def batchnorm_donet_kernel(xt_ref,
                           w1_ref, g1_ref, be1_ref, bits1_ref,
                           w2_ref, g2_ref, be2_ref, bits2_ref,
                           w3_ref, b3_ref,
                           o_ref):
    xt = xt_ref[...]            # (5, N)  batch on lanes
    w1 = w1_ref[...]            # (64, 5)

    # fc1 as 5 rank-1 VPU FMAs (K=5 is far too small to feed the MXU).
    # b1 is omitted: a per-feature constant before training-mode BN cancels exactly.
    h1 = w1[:, 0:1] * xt[0:1, :]
    for k in range(1, 5):
        h1 = h1 + w1[:, k:k + 1] * xt[k:k + 1, :]         # (64, N)
    h1 = _bn_relu_dropout(h1, g1_ref[...], be1_ref[...], bits1_ref[...])

    # fc2 on the MXU: (32, 64) @ (64, N).  b2 omitted (cancelled by BN mean).
    h2 = jnp.dot(w2_ref[...], h1, preferred_element_type=jnp.float32)   # (32, N)
    h2 = _bn_relu_dropout(h2, g2_ref[...], be2_ref[...], bits2_ref[...])

    # fc3 (out_features = 1) as elementwise multiply + sublane reduce; avoids a
    # degenerate 1-wide matmul and produces a lane-dense (1, N) store.
    o_ref[...] = jnp.sum(w3_ref[...] * h2, axis=0, keepdims=True) + b3_ref[...]


def batchnorm_donet_forward(x, params, key):
    n = x.shape[0]
    # Dropout mask bits are drawn with jax.random in the wrapper (the stateful TPU
    # hardware PRNG has no interpret-mode lowering); the compare/select stays fused
    # in-kernel.  Pass a fresh `key` per training step for fresh masks.
    kb1, kb2 = jax.random.split(key)
    bits1 = jax.random.bits(kb1, (64, n), dtype=jnp.uint32)
    bits2 = jax.random.bits(kb2, (32, n), dtype=jnp.uint32)

    # Single-shot, grid-less call: everything fits comfortably in VMEM at these
    # sizes.  TODO(synk): for very large N (esp. v7x's 64 MiB VMEM) switch to a
    # two-pass tiled design (grid over N, stats accumulated in VMEM scratch).
    vmem = pl.BlockSpec(memory_space=pltpu.MemorySpace.VMEM)
    out = pl.pallas_call(
        batchnorm_donet_kernel,
        out_shape=jax.ShapeDtypeStruct((1, n), jnp.float32),
        in_specs=[vmem] * 11,
        out_specs=vmem,
    )(x.T,
      params["w1"], params["g1"], params["be1"], bits1,
      params["w2"], params["g2"], params["be2"], bits2,
      params["w3"], params["b3"])
    return out.reshape(n, 1)


def init_params(key):
    # PyTorch Linear default init U(-1/sqrt(fan_in), 1/sqrt(fan_in)); BN: gamma=1, beta=0.
    ks = jax.random.split(key, 6)

    def linear(kw, kb, fan_in, fan_out):
        bound = 1.0 / (fan_in ** 0.5)
        w = jax.random.uniform(kw, (fan_out, fan_in), jnp.float32, -bound, bound)
        b = jax.random.uniform(kb, (fan_out, 1), jnp.float32, -bound, bound)
        return w, b

    w1, _b1 = linear(ks[0], ks[1], 5, 64)     # b1 unused: cancels under BN mean subtraction
    w2, _b2 = linear(ks[2], ks[3], 64, 32)    # b2 unused: cancels under BN mean subtraction
    w3, b3 = linear(ks[4], ks[5], 32, 1)
    return {
        "w1": w1,                                     # (64, 5)
        "g1": jnp.ones((64, 1), jnp.float32),
        "be1": jnp.zeros((64, 1), jnp.float32),
        "w2": w2,                                     # (32, 64)
        "g2": jnp.ones((32, 1), jnp.float32),
        "be2": jnp.zeros((32, 1), jnp.float32),
        "w3": w3.T,                                   # (32, 1) column for the in-kernel reduce
        "b3": b3.reshape(1, 1),
    }


if __name__ == "__main__":
    key = jax.random.PRNGKey(0)
    k_param, k_x, k_drop = jax.random.split(key, 3)

    params = init_params(k_param)
    batch = 8
    x = jax.random.normal(k_x, (batch, 5), jnp.float32)

    out = batchnorm_donet_forward(x, params, k_drop)
    out = jax.block_until_ready(out)

    assert out.shape == (batch, 1) and out.dtype == jnp.float32
    print("KERNEL_OK")
</pallas_src>

<mosaic_0001>
module attributes {stable_mosaic.version = 11 : i64} {
  func.func @batchnorm_donet_kernel(%arg0: memref<5x8xf32, #tpu.memory_space<vmem>>, %arg1: memref<64x5xf32, #tpu.memory_space<vmem>>, %arg2: memref<64x1xf32, #tpu.memory_space<vmem>>, %arg3: memref<64x1xf32, #tpu.memory_space<vmem>>, %arg4: memref<64x8xi32, #tpu.memory_space<vmem>>, %arg5: memref<32x64xf32, #tpu.memory_space<vmem>>, %arg6: memref<32x1xf32, #tpu.memory_space<vmem>>, %arg7: memref<32x1xf32, #tpu.memory_space<vmem>>, %arg8: memref<32x8xi32, #tpu.memory_space<vmem>>, %arg9: memref<32x1xf32, #tpu.memory_space<vmem>>, %arg10: memref<1x1xf32, #tpu.memory_space<vmem>>, %arg11: memref<1x8xf32, #tpu.memory_space<vmem>>) attributes {dimension_semantics = [], scalar_prefetch = 0 : i64, scratch_operands = 0 : i64, tpu.core_type = #tpu.core_type<tc>} {
    %c0 = arith.constant 0 : index
    %c0_0 = arith.constant 0 : index
    %0 = vector.load %arg0[%c0, %c0_0] : memref<5x8xf32, #tpu.memory_space<vmem>>, vector<5x8xf32>
    %c0_1 = arith.constant 0 : index
    %c0_2 = arith.constant 0 : index
    %1 = vector.load %arg1[%c0_1, %c0_2] : memref<64x5xf32, #tpu.memory_space<vmem>>, vector<64x5xf32>
    %2 = vector.extract_strided_slice %1 {offsets = [0, 0], sizes = [64, 1], strides = [1, 1]} : vector<64x5xf32> to vector<64x1xf32>
    %3 = vector.extract_strided_slice %0 {offsets = [0, 0], sizes = [1, 8], strides = [1, 1]} : vector<5x8xf32> to vector<1x8xf32>
    %4 = vector.broadcast %2 : vector<64x1xf32> to vector<64x8xf32>
    %5 = vector.broadcast %3 : vector<1x8xf32> to vector<64x8xf32>
    %6 = arith.mulf %4, %5 : vector<64x8xf32>
    %7 = vector.extract_strided_slice %1 {offsets = [0, 1], sizes = [64, 1], strides = [1, 1]} : vector<64x5xf32> to vector<64x1xf32>
    %8 = vector.extract_strided_slice %0 {offsets = [1, 0], sizes = [1, 8], strides = [1, 1]} : vector<5x8xf32> to vector<1x8xf32>
    %9 = vector.broadcast %7 : vector<64x1xf32> to vector<64x8xf32>
    %10 = vector.broadcast %8 : vector<1x8xf32> to vector<64x8xf32>
    %11 = arith.mulf %9, %10 : vector<64x8xf32>
    %12 = arith.addf %6, %11 : vector<64x8xf32>
    %13 = vector.extract_strided_slice %1 {offsets = [0, 2], sizes = [64, 1], strides = [1, 1]} : vector<64x5xf32> to vector<64x1xf32>
    %14 = vector.extract_strided_slice %0 {offsets = [2, 0], sizes = [1, 8], strides = [1, 1]} : vector<5x8xf32> to vector<1x8xf32>
    %15 = vector.broadcast %13 : vector<64x1xf32> to vector<64x8xf32>
    %16 = vector.broadcast %14 : vector<1x8xf32> to vector<64x8xf32>
    %17 = arith.mulf %15, %16 : vector<64x8xf32>
    %18 = arith.addf %12, %17 : vector<64x8xf32>
    %19 = vector.extract_strided_slice %1 {offsets = [0, 3], sizes = [64, 1], strides = [1, 1]} : vector<64x5xf32> to vector<64x1xf32>
    %20 = vector.extract_strided_slice %0 {offsets = [3, 0], sizes = [1, 8], strides = [1, 1]} : vector<5x8xf32> to vector<1x8xf32>
    %21 = vector.broadcast %19 : vector<64x1xf32> to vector<64x8xf32>
    %22 = vector.broadcast %20 : vector<1x8xf32> to vector<64x8xf32>
    %23 = arith.mulf %21, %22 : vector<64x8xf32>
    %24 = arith.addf %18, %23 : vector<64x8xf32>
    %25 = vector.extract_strided_slice %1 {offsets = [0, 4], sizes = [64, 1], strides = [1, 1]} : vector<64x5xf32> to vector<64x1xf32>
    %26 = vector.extract_strided_slice %0 {offsets = [4, 0], sizes = [1, 8], strides = [1, 1]} : vector<5x8xf32> to vector<1x8xf32>
    %27 = vector.broadcast %25 : vector<64x1xf32> to vector<64x8xf32>
    %28 = vector.broadcast %26 : vector<1x8xf32> to vector<64x8xf32>
    %29 = arith.mulf %27, %28 : vector<64x8xf32>
    %30 = arith.addf %24, %29 : vector<64x8xf32>
    %c0_3 = arith.constant 0 : index
    %c0_4 = arith.constant 0 : index
    %31 = vector.load %arg2[%c0_3, %c0_4] : memref<64x1xf32, #tpu.memory_space<vmem>>, vector<64x1xf32>
    %c0_5 = arith.constant 0 : index
    %c0_6 = arith.constant 0 : index
    %32 = vector.load %arg3[%c0_5, %c0_6] : memref<64x1xf32, #tpu.memory_space<vmem>>, vector<64x1xf32>
    %c0_7 = arith.constant 0 : index
    %c0_8 = arith.constant 0 : index
    %33 = vector.load %arg4[%c0_7, %c0_8] : memref<64x8xi32, #tpu.memory_space<vmem>>, vector<64x8xi32>
    %cst = arith.constant dense<0.000000e+00> : vector<64xf32>
    %34 = vector.multi_reduction <add>, %30, %cst [1] : vector<64x8xf32> to vector<64xf32>
    %35 = vector.shape_cast %34 : vector<64xf32> to vector<64x1xf32>
    %cst_9 = arith.constant 8.000000e+00 : f32
    %36 = vector.broadcast %cst_9 : f32 to vector<64x1xf32>
    %37 = arith.divf %35, %36 : vector<64x1xf32>
    %38 = vector.broadcast %37 : vector<64x1xf32> to vector<64x8xf32>
    %39 = arith.subf %30, %38 : vector<64x8xf32>
    %40 = arith.mulf %39, %39 : vector<64x8xf32>
    %cst_10 = arith.constant dense<0.000000e+00> : vector<64xf32>
    %41 = vector.multi_reduction <add>, %40, %cst_10 [1] : vector<64x8xf32> to vector<64xf32>
    %42 = vector.shape_cast %41 : vector<64xf32> to vector<64x1xf32>
    %cst_11 = arith.constant 8.000000e+00 : f32
    %43 = vector.broadcast %cst_11 : f32 to vector<64x1xf32>
    %44 = arith.divf %42, %43 : vector<64x1xf32>
    %cst_12 = arith.constant 9.99999974E-6 : f32
    %45 = vector.broadcast %cst_12 : f32 to vector<64x1xf32>
    %46 = arith.addf %44, %45 : vector<64x1xf32>
    %47 = math.rsqrt %46 : vector<64x1xf32>
    %48 = arith.mulf %31, %47 : vector<64x1xf32>
    %cst_13 = arith.constant 2.000000e+00 : f32
    %49 = vector.broadcast %cst_13 : f32 to vector<64x1xf32>
    %50 = arith.mulf %48, %49 : vector<64x1xf32>
    %cst_14 = arith.constant 2.000000e+00 : f32
    %51 = vector.broadcast %cst_14 : f32 to vector<64x1xf32>
    %52 = arith.mulf %32, %51 : vector<64x1xf32>
    %53 = vector.broadcast %50 : vector<64x1xf32> to vector<64x8xf32>
    %54 = arith.mulf %39, %53 : vector<64x8xf32>
    %55 = vector.broadcast %52 : vector<64x1xf32> to vector<64x8xf32>
    %56 = arith.addf %54, %55 : vector<64x8xf32>
    %cst_15 = arith.constant 0.000000e+00 : f32
    %57 = vector.broadcast %cst_15 : f32 to vector<64x8xf32>
    %58 = arith.maximumf %56, %57 : vector<64x8xf32>
    %c-2147483648_i32 = arith.constant -2147483648 : i32
    %59 = vector.broadcast %c-2147483648_i32 : i32 to vector<64x8xi32>
    %60 = arith.cmpi uge, %33, %59 : vector<64x8xi32>
    %cst_16 = arith.constant 0.000000e+00 : f32
    %61 = vector.broadcast %cst_16 : f32 to vector<64x8xf32>
    %62 = arith.select %60, %58, %61 : vector<64x8xi1>, vector<64x8xf32>
    %c0_17 = arith.constant 0 : index
    %c0_18 = arith.constant 0 : index
    %63 = vector.load %arg5[%c0_17, %c0_18] : memref<32x64xf32, #tpu.memory_space<vmem>>, vector<32x64xf32>
    %cst_19 = arith.constant dense<0.000000e+00> : vector<32x8xf32>
    %64 = tpu.matmul %63, %62, %cst_19 {dimension_numbers = #tpu.dot_dimension_numbers<[1], [0], [0], [1], [0, 0, 1, 1], [], []>} : vector<32x64xf32>, vector<64x8xf32>, vector<32x8xf32> -> vector<32x8xf32>
    %c0_20 = arith.constant 0 : index
    %c0_21 = arith.constant 0 : index
    %65 = vector.load %arg6[%c0_20, %c0_21] : memref<32x1xf32, #tpu.memory_space<vmem>>, vector<32x1xf32>
    %c0_22 = arith.constant 0 : index
    %c0_23 = arith.constant 0 : index
    %66 = vector.load %arg7[%c0_22, %c0_23] : memref<32x1xf32, #tpu.memory_space<vmem>>, vector<32x1xf32>
    %c0_24 = arith.constant 0 : index
    %c0_25 = arith.constant 0 : index
    %67 = vector.load %arg8[%c0_24, %c0_25] : memref<32x8xi32, #tpu.memory_space<vmem>>, vector<32x8xi32>
    %cst_26 = arith.constant dense<0.000000e+00> : vector<32xf32>
    %68 = vector.multi_reduction <add>, %64, %cst_26 [1] : vector<32x8xf32> to vector<32xf32>
    %69 = vector.shape_cast %68 : vector<32xf32> to vector<32x1xf32>
    %cst_27 = arith.constant 8.000000e+00 : f32
    %70 = vector.broadcast %cst_27 : f32 to vector<32x1xf32>
    %71 = arith.divf %69, %70 : vector<32x1xf32>
    %72 = vector.broadcast %71 : vector<32x1xf32> to vector<32x8xf32>
    %73 = arith.subf %64, %72 : vector<32x8xf32>
    %74 = arith.mulf %73, %73 : vector<32x8xf32>
    %cst_28 = arith.constant dense<0.000000e+00> : vector<32xf32>
    %75 = vector.multi_reduction <add>, %74, %cst_28 [1] : vector<32x8xf32> to vector<32xf32>
    %76 = vector.shape_cast %75 : vector<32xf32> to vector<32x1xf32>
    %cst_29 = arith.constant 8.000000e+00 : f32
    %77 = vector.broadcast %cst_29 : f32 to vector<32x1xf32>
    %78 = arith.divf %76, %77 : vector<32x1xf32>
    %cst_30 = arith.constant 9.99999974E-6 : f32
    %79 = vector.broadcast %cst_30 : f32 to vector<32x1xf32>
    %80 = arith.addf %78, %79 : vector<32x1xf32>
    %81 = math.rsqrt %80 : vector<32x1xf32>
    %82 = arith.mulf %65, %81 : vector<32x1xf32>
    %cst_31 = arith.constant 2.000000e+00 : f32
    %83 = vector.broadcast %cst_31 : f32 to vector<32x1xf32>
    %84 = arith.mulf %82, %83 : vector<32x1xf32>
    %cst_32 = arith.constant 2.000000e+00 : f32
    %85 = vector.broadcast %cst_32 : f32 to vector<32x1xf32>
    %86 = arith.mulf %66, %85 : vector<32x1xf32>
    %87 = vector.broadcast %84 : vector<32x1xf32> to vector<32x8xf32>
    %88 = arith.mulf %73, %87 : vector<32x8xf32>
    %89 = vector.broadcast %86 : vector<32x1xf32> to vector<32x8xf32>
    %90 = arith.addf %88, %89 : vector<32x8xf32>
    %cst_33 = arith.constant 0.000000e+00 : f32
    %91 = vector.broadcast %cst_33 : f32 to vector<32x8xf32>
    %92 = arith.maximumf %90, %91 : vector<32x8xf32>
    %c-2147483648_i32_34 = arith.constant -2147483648 : i32
    %93 = vector.broadcast %c-2147483648_i32_34 : i32 to vector<32x8xi32>
    %94 = arith.cmpi uge, %67, %93 : vector<32x8xi32>
    %cst_35 = arith.constant 0.000000e+00 : f32
    %95 = vector.broadcast %cst_35 : f32 to vector<32x8xf32>
    %96 = arith.select %94, %92, %95 : vector<32x8xi1>, vector<32x8xf32>
    %c0_36 = arith.constant 0 : index
    %c0_37 = arith.constant 0 : index
    %97 = vector.load %arg9[%c0_36, %c0_37] : memref<32x1xf32, #tpu.memory_space<vmem>>, vector<32x1xf32>
    %98 = vector.broadcast %97 : vector<32x1xf32> to vector<32x8xf32>
    %99 = arith.mulf %98, %96 : vector<32x8xf32>
    %cst_38 = arith.constant dense<0.000000e+00> : vector<8xf32>
    %100 = vector.multi_reduction <add>, %99, %cst_38 [0] : vector<32x8xf32> to vector<8xf32>
    %101 = vector.shape_cast %100 : vector<8xf32> to vector<1x8xf32>
    %c0_39 = arith.constant 0 : index
    %c0_40 = arith.constant 0 : index
    %102 = vector.load %arg10[%c0_39, %c0_40] : memref<1x1xf32, #tpu.memory_space<vmem>>, vector<1x1xf32>
    %103 = vector.broadcast %102 : vector<1x1xf32> to vector<1x8xf32>
    %104 = arith.addf %101, %103 : vector<1x8xf32>
    %c0_41 = arith.constant 0 : index
    %c0_42 = arith.constant 0 : index
    %105 = vector.load %arg11[%c0_41, %c0_42] : memref<1x8xf32, #tpu.memory_space<vmem>>, vector<1x8xf32>
    tpu.vector_store %arg11[%c0_41, %c0_42], %104 {strides = array<i32>} : memref<1x8xf32, #tpu.memory_space<vmem>>, vector<1x8xf32>,
    return
  }
}

</mosaic_0001>

<bundles_post_ra>
// kernel: tpu_custom_call.1
= control target key start
LH: loop header
LB: loop body
LE: loop exit
PB: predicated region body
PF: predicated region fallthrough
CT: control target
= control target key end

     0   :  { %s1470_s0 = inlined_call_operand.vmem [shape: f32[5,8], index: 0, kind: input, shape index: {}]   ;;  %s1471_s1 = inlined_call_operand.vmem [shape: f32[64,5], index: 1, kind: input, shape index: {}]   ;;  %s1472_s2 = inlined_call_operand.vmem [shape: f32[64,1], index: 2, kind: input, shape index: {}]   ;;  %s1473_s3 = inlined_call_operand.vmem [shape: f32[64,1], index: 3, kind: input, shape index: {}]   ;;  %s1474_s4 = inlined_call_operand.vmem [shape: u32[64,8], index: 4, kind: input, shape index: {}]   ;;  %s1475_s5 = inlined_call_operand.vmem [shape: f32[32,64], index: 5, kind: input, shape index: {}]   ;;  %s1476_s6 = inlined_call_operand.vmem [shape: f32[32,1], index: 6, kind: input, shape index: {}]   ;;  %s1477_s7 = inlined_call_operand.vmem [shape: f32[32,1], index: 7, kind: input, shape index: {}]   ;;  %s1478_s8 = inlined_call_operand.vmem [shape: u32[32,8], index: 8, kind: input, shape index: {}]   ;;  %s1479_s9 = inlined_call_operand.vmem [shape: f32[32,1], index: 9, kind: input, shape index: {}]   ;;  %s1480_s10 = inlined_call_operand.<no memory space> [shape: f32[1,1], index: 10, kind: input, shape index: {}]   ;;  %s1481_s11 = inlined_call_operand.hbm [shape: f32[1,8], index: 11, kind: output, shape index: {}]  }
   0x1   :  { %v16_v0 = vstv %s1480_s10 }
   0x2   :  { %17 = vst [vmem:[#allocation2] sm:$0x1] %v16_v0 }
   0x3   :  { %v49_v1 = vld [vmem:[%s1471_s1 + $0x38] sm:$0xff]  ;;  %v48_v2 = vld [vmem:[%s1471_s1 + $0x30] sm:$0xff]  ;;  %v1024_v3 = vmov 1   ;;  %v1025_v4 = vmov 0  }
   0x4   :  { %946 = vset.pattern.permute.xlu0 %v1024_v3  ;;  %947 = vset.pattern.permute.xlu1 %v1025_v4  ;;  %v1104_v5 = vld [vmem:[%s1471_s1 + $0x10] sm:$0xff] }
   0x5   :  { %131 = vperm.xlu0 %946, %v49_v1   ;;  %82 = vperm.xlu1 %947, %v48_v2  }
   0x6   :  { %18 = vsyncpa [#allocation4], 0  ;;  %v47_v6 = vld [vmem:[%s1471_s1 + $0x28] sm:$0xff]  ;;  %v1026_v7 = vmov 4   ;;  %v1027_v8 = vmov 2   ;;  %v46_v9 = vld [vmem:[%s1471_s1 + $0x20] sm:$0xff]  ;;  %v90_v23 = vlaneseq }
   0x7   :  { %v45_v10 = vld [vmem:[%s1471_s1 + $0x18] sm:$0xff]  ;;  %v42_v11 = vld [vmem:[%s1471_s1] sm:$0xff]  ;;  %v1028_v12 = vmov 3   ;;  %v43_v13 = vld [vmem:[%s1471_s1 + $0x8] sm:$0xff]  ;;  %vm334_vm0 = vcmask 64512   ;;  %vm580_vm1 = vcmask 523264  }
   0x8   :  { %v1156_v25 = vshrl.u32 %v90_v23, 7  ;;  %v41_v31 = vld [vmem:[%s1470_s0] sm:$0x1f]  ;;  %vm862_vm14 = vcmask 57344  }
   0x9   :  { %948 = vset.pattern.permute.xlu1 %v1024_v3  ;;  %111 = vperm.xlu0 %946, %v1104_v5  }
   0xa   :  { %127 = vperm.xlu1 %948, %v48_v2   ;;  %v92_v28 = vsub.s32 0, %v1156_v25  ;;  %v136_v29 = vsub.s32 1, %v1156_v25  ;;  %v188_v35 = vsub.s32 2, %v1156_v25  ;;  %v292_v40 = vsub.s32 4, %v1156_v25 }
   0xb   :  { %v240_v41 = vsub.s32 3, %v1156_v25 }
   0xc   :  { %v1169_v33 = vrot.slane %v41_v31, %v92_v28  ;;  %v1171_v34 = vrot.slane %v41_v31, %v136_v29  ;;  %v1176_v39 = vrot.slane %v41_v31, %v188_v35  ;;  %v1184_v47 = vrot.slane %v41_v31, %v292_v40 }
   0xd   :  { %962 = vset.pattern.permute.xlu0 %v1026_v7  ;;  %v1187_v49 = vrot.slane %v41_v31, %v240_v41 }
   0xe   :  { %949 = vset.pattern.permute.xlu1 %v1027_v8  ;;  %279 = vperm.xlu0 %962, %v47_v6  }
   0xf   :  { %183 = vperm.xlu1 %949, %v49_v1  }
  0x12   :  { %963 = vset.pattern.permute.xlu0 %v1027_v8 }
  0x13   :  { %950 = vset.pattern.permute.xlu1 %v1024_v3  ;;  %175 = vperm.xlu0 %963, %v47_v6  }
  0x14   :  { %123 = vperm.xlu1 %950, %v47_v6  }
  0x17   :  { %163 = vperm.xlu0 %963, %v1104_v5  }
  0x18   :  { %951 = vset.pattern.permute.xlu1 %v1027_v8 }
  0x19   :  { %179 = vperm.xlu1 %951, %v48_v2  }
  0x1b   :  { %966 = vset.pattern.permute.xlu0 %v1025_v4 }
  0x1c   :  { %87 = vperm.xlu0 %966, %v49_v1  }
  0x1d   :  { %952 = vset.pattern.permute.xlu1 %v1025_v4 }
  0x1e   :  { %72 = vperm.xlu1 %952, %v46_v9  }
  0x20   :  { %77 = vperm.xlu0 %966, %v47_v6  }
  0x22   :  { %953 = vset.pattern.permute.xlu1 %v1024_v3 }
  0x23   :  { %119 = vperm.xlu1 %953, %v46_v9  }
  0x24   :  { %67 = vperm.xlu0 %966, %v45_v10  }
  0x27   :  { %954 = vset.pattern.permute.xlu1 %v1028_v12 }
  0x28   :  { %231 = vperm.xlu1 %954, %v48_v2   ;;  %52 = vperm.xlu0 %966, %v42_v11  }
  0x2c   :  { %955 = vset.pattern.permute.xlu1 %v1026_v7  ;;  %969 = vset.pattern.permute.xlu0 %v1028_v12 }
  0x2d   :  { %287 = vperm.xlu1 %955, %v49_v1   ;;  %235 = vperm.xlu0 %969, %v49_v1  }
  0x31   :  { %956 = vset.pattern.permute.xlu1 %v1024_v3  ;;  %227 = vperm.xlu0 %969, %v47_v6  }
  0x32   :  { %115 = vperm.xlu1 %956, %v45_v10  }
  0x35   :  { %215 = vperm.xlu0 %969, %v1104_v5  }
  0x36   :  { %957 = vset.pattern.permute.xlu1 %v1027_v8 }
  0x37   :  { %171 = vperm.xlu1 %957, %v46_v9  }
  0x39   :  { %211 = vperm.xlu0 %969, %v43_v13  }
  0x3b   :  { %958 = vset.pattern.permute.xlu1 %v1026_v7 }
  0x3c   :  { %283 = vperm.xlu1 %958, %v48_v2  }
  0x3d   :  { %207 = vperm.xlu0 %969, %v42_v11  }
  0x40   :  { %959 = vset.pattern.permute.xlu1 %v1025_v4 }
  0x41   :  { %62 = vperm.xlu1 %959, %v1104_v5   ;;  %975 = vset.pattern.permute.xlu0 %v1026_v7 }
  0x42   :  { %259 = vperm.xlu0 %975, %v42_v11  }
  0x45   :  { %960 = vset.pattern.permute.xlu1 %v1027_v8 }
  0x46   :  { %167 = vperm.xlu1 %960, %v45_v10   ;;  %977 = vset.pattern.permute.xlu0 %v1025_v4 }
  0x4a   :  { %961 = vset.pattern.permute.xlu1 %v1028_v12 }
  0x4b   :  { %223 = vperm.xlu1 %961, %v46_v9  }
  0x4f   :  { %964 = vset.pattern.permute.xlu1 %v1025_v4 }
  0x50   :  { %57 = vperm.xlu1 %964, %v43_v13  }
  0x54   :  { %965 = vset.pattern.permute.xlu1 %v1024_v3 }
  0x55   :  { %107 = vperm.xlu1 %965, %v43_v13  }
  0x59   :  { %967 = vset.pattern.permute.xlu1 %v1028_v12 }
  0x5a   :  { %219 = vperm.xlu1 %967, %v45_v10  }
  0x5e   :  { %968 = vset.pattern.permute.xlu1 %v1026_v7 }
  0x5f   :  { %275 = vperm.xlu1 %968, %v46_v9  }
  0x63   :  { %970 = vset.pattern.permute.xlu1 %v1024_v3 }
  0x64   :  { %103 = vperm.xlu1 %970, %v42_v11  }
  0x68   :  { %971 = vset.pattern.permute.xlu1 %v1027_v8 }
  0x69   :  { %159 = vperm.xlu1 %971, %v43_v13  }
  0x6d   :  { %972 = vset.pattern.permute.xlu1 %v1026_v7 }
  0x6e   :  { %271 = vperm.xlu1 %972, %v45_v10  }
  0x72   :  { %973 = vset.pattern.permute.xlu1 %v1027_v8 }
  0x73   :  { %155 = vperm.xlu1 %973, %v42_v11  }
  0x77   :  { %974 = vset.pattern.permute.xlu1 %v1026_v7 }
  0x78   :  { %267 = vperm.xlu1 %974, %v1104_v5  }
  0x7c   :  { %263 = vperm.xlu1 %974, %v43_v13  }
  0x80   :  { %v83_v14 = vpop.permute.xlu1 %82  ;;  %v132_v15 = vpop.permute.xlu0 %131  ;;  %976 = vset.pattern.permute.xlu1 %v1025_v4 }
  0x81   :  { %v145_v37 = vmul.f32 %v1171_v34, %v132_v15  ;;  %v100_v4 = vmul.f32 %v1169_v33, %v83_v14 }
  0x84   :  { %v1152_v16 = vpop.permute.xlu0 %111 }
  0x85   :  { %v128_v17 = vpop.permute.xlu1 %127 }
  0x86   :  { %v144_v2 = vmul.f32 %v1171_v34, %v128_v17 }
  0x88   :  { %v152_v8 = vadd.f32 %v144_v2, %v100_v4 }
  0x89   :  { %v280_v18 = vpop.permute.xlu0 %279 }
  0x8a   :  { %v184_v19 = vpop.permute.xlu1 %183  ;;  %v299_v59 = vmul.f32 %v1184_v47, %v280_v18 }
  0x8b   :  { %v197_v46 = vmul.f32 %v1176_v39, %v184_v19  ;;  %v140_v19 = vmul.f32 %v1171_v34, %v1152_v16 }
  0x8e   :  { %v176_v20 = vpop.permute.xlu0 %175 }
  0x8f   :  { %v124_v21 = vpop.permute.xlu1 %123  ;;  %v195_v52 = vmul.f32 %v1176_v39, %v176_v20 }
  0x90   :  { %v143_v48 = vmul.f32 %v1171_v34, %v124_v21 }
  0x92   :  { %v1154_v22 = vpop.permute.xlu0 %163 }
  0x93   :  { %v192_v20 = vmul.f32 %v1176_v39, %v1154_v22 }
  0x94   :  { %v180_v24 = vpop.permute.xlu1 %179 }
  0x95   :  { %v196_v5 = vmul.f32 %v1176_v39, %v180_v24 }
  0x97   :  { %v88_v26 = vpop.permute.xlu0 %87  ;;  %v204_v10 = vadd.f32 %v196_v5, %v152_v8 }
  0x98   :  { %v101_v38 = vmul.f32 %v1169_v33, %v88_v26 }
  0x99   :  { %v1158_v27 = vpop.permute.xlu1 %72 }
  0x9a   :  { %v153_v44 = vadd.f32 %v145_v37, %v101_v38 }
  0x9b   :  { %v78_v30 = vpop.permute.xlu0 %77 }
  0x9c   :  { %v99_v45 = vmul.f32 %v1169_v33, %v78_v30  ;;  %v205_v54 = vadd.f32 %v197_v46, %v153_v44 }
  0x9e   :  { %v1165_v32 = vpop.permute.xlu1 %119  ;;  %v151_v53 = vadd.f32 %v143_v48, %v99_v45 }
  0x9f   :  { %v68_v36 = vpop.permute.xlu0 %67  ;;  %v142_v22 = vmul.f32 %v1171_v34, %v1165_v32 }
  0xa0   :  { %v203_v60 = vadd.f32 %v195_v52, %v151_v53  ;;  %v97_v37 = vmul.f32 %v1169_v33, %v68_v36 }
  0xa3   :  { %v232_v42 = vpop.permute.xlu1 %231  ;;  %v1180_v43 = vpop.permute.xlu0 %52 }
  0xa4   :  { %v248_v9 = vmul.f32 %v1187_v49, %v232_v42  ;;  %v98_v42 = vmul.f32 %v1169_v33, %v1158_v27 }
  0xa6   :  { %v256_v12 = vadd.f32 %v248_v9, %v204_v10 }
  0xa8   :  { %v288_v50 = vpop.permute.xlu1 %287  ;;  %v236_v51 = vpop.permute.xlu0 %235 }
  0xa9   :  { %v249_v55 = vmul.f32 %v1187_v49, %v236_v51  ;;  %v301_v56 = vmul.f32 %v1184_v47, %v288_v50  ;;  %v150_v50 = vadd.f32 %v142_v22, %v98_v42 }
  0xab   :  { %v257_v57 = vadd.f32 %v249_v55, %v205_v54 }
  0xac   :  { %v228_v58 = vpop.permute.xlu0 %227 }
  0xad   :  { %v247_v61 = vmul.f32 %v1187_v49, %v228_v58  ;;  %v116_v62 = vpop.permute.xlu1 %115  ;;  %v1194_v63 = vadd.f32 %v301_v56, %v257_v57 }
  0xae   :  { %v141_v38 = vmul.f32 %v1171_v34, %v116_v62 }
  0xaf   :  { %v255_v0 = vadd.f32 %v247_v61, %v203_v60  ;;  %v356_v1 = vsel %vm334_vm0, %v1194_v63, 0.0 }
  0xb0   :  { %357 = vadd.xlane.f32.xlu1 %v356_v1  ;;  %v216_v18 = vpop.permute.xlu0 %215  ;;  %v149_v41 = vadd.f32 %v141_v38, %v97_v37 }
  0xb1   :  { %v1199_v3 = vadd.f32 %v299_v59, %v255_v0  ;;  %v244_v24 = vmul.f32 %v1187_v49, %v216_v18  ;;  %v94_v0 = vmul.f32 %v1169_v33, %v1180_v43 }
  0xb2   :  { %v172_v6 = vpop.permute.xlu1 %171 }
  0xb3   :  { %v350_v7 = vsel %vm334_vm0, %v1199_v3, 0.0  ;;  %v194_v44 = vmul.f32 %v1176_v39, %v172_v6 }
  0xb4   :  { %351 = vadd.xlane.f32.xlu1 %v350_v7  ;;  %v212_v58 = vpop.permute.xlu0 %211 }
  0xb5   :  { %v202_v52 = vadd.f32 %v194_v44, %v150_v50 }
  0xb7   :  { %v284_v11 = vpop.permute.xlu1 %283 }
  0xb8   :  { %v300_v13 = vmul.f32 %v1184_v47, %v284_v11  ;;  %v208_v1 = vpop.permute.xlu0 %207 }
  0xb9   :  { %v242_v10 = vmul.f32 %v1187_v49, %v208_v1 }
  0xba   :  { %v1207_v15 = vadd.f32 %v300_v13, %v256_v12 }
  0xbc   :  { %v63_v17 = vpop.permute.xlu1 %62  ;;  %v353_v14 = vsel %vm334_vm0, %v1207_v15, 0.0 }
  0xbd   :  { %v96_v21 = vmul.f32 %v1169_v33, %v63_v17  ;;  %354 = vadd.xlane.f32.xlu0 %v353_v14  ;;  %v260_v12 = vpop.permute.xlu0 %259 }
  0xbf   :  { %v148_v23 = vadd.f32 %v140_v19, %v96_v21  ;;  %v243_v19 = vmul.f32 %v1187_v49, %v212_v58 }
  0xc1   :  { %v200_v26 = vadd.f32 %v192_v20, %v148_v23  ;;  %v168_v29 = vpop.permute.xlu1 %167 }
  0xc2   :  { %v193_v16 = vmul.f32 %v1176_v39, %v168_v29 }
  0xc3   :  { %v252_v30 = vadd.f32 %v244_v24, %v200_v26 }
  0xc4   :  { %v201_v46 = vadd.f32 %v193_v16, %v149_v41 }
  0xc6   :  { %v224_v31 = vpop.permute.xlu1 %223 }
  0xc7   :  { %v246_v36 = vmul.f32 %v1187_v49, %v224_v31 }
  0xc9   :  { %v254_v54 = vadd.f32 %v246_v36, %v202_v52 }
  0xcb   :  { %v58_v35 = vpop.permute.xlu1 %57 }
  0xcc   :  { %v95_v8 = vmul.f32 %v1169_v33, %v58_v35 }
  0xd0   :  { %v108_v40 = vpop.permute.xlu1 %107 }
  0xd1   :  { %v139_v2 = vmul.f32 %v1171_v34, %v108_v40 }
  0xd3   :  { %v147_v13 = vadd.f32 %v139_v2, %v95_v8 }
  0xd5   :  { %v220_v45 = vpop.permute.xlu1 %219 }
  0xd6   :  { %v245_v48 = vmul.f32 %v1187_v49, %v220_v45 }
  0xd8   :  { %v253_v51 = vadd.f32 %v245_v48, %v201_v46 }
  0xda   :  { %v276_v53 = vpop.permute.xlu1 %275 }
  0xdb   :  { %v298_v55 = vmul.f32 %v1184_v47, %v276_v53 }
  0xdd   :  { %v306_v32 = vadd.f32 %v298_v55, %v254_v54 }
  0xdf   :  { %v104_v56 = vpop.permute.xlu1 %103  ;;  %v347_v57 = vsel %vm334_vm0, %v306_v32, 0.0 }
  0xe0   :  { %348 = vadd.xlane.f32.xlu0 %v347_v57  ;;  %v138_v61 = vmul.f32 %v1171_v34, %v104_v56  ;;  %v294_v34 = vmul.f32 %v1184_v47, %v260_v12 }
  0xe2   :  { %v146_v6 = vadd.f32 %v138_v61, %v94_v0 }
  0xe4   :  { %v160_v27 = vpop.permute.xlu1 %159 }
  0xe5   :  { %v191_v9 = vmul.f32 %v1176_v39, %v160_v27 }
  0xe7   :  { %v199_v14 = vadd.f32 %v191_v9, %v147_v13  ;;  %v324_v9 = vld [vmem:[%s1473_s3 + $0x30] sm:$0xff]  ;;  %v322_v13 = vld [vmem:[%s1473_s3 + $0x20] sm:$0xff] }
  0xe9   :  { %v272_v59 = vpop.permute.xlu1 %271  ;;  %v251_v23 = vadd.f32 %v243_v19, %v199_v14 }
  0xea   :  { %v297_v60 = vmul.f32 %v1184_v47, %v272_v59 }
  0xec   :  { %v305_v62 = vadd.f32 %v297_v60, %v253_v51 }
  0xee   :  { %v156_v4 = vpop.permute.xlu1 %155  ;;  %v344_v5 = vsel %vm334_vm0, %v305_v62, 0.0 }
  0xef   :  { %v190_v7 = vmul.f32 %v1176_v39, %v156_v4  ;;  %345 = vadd.xlane.f32.xlu1 %v344_v5 }
  0xf1   :  { %v198_v11 = vadd.f32 %v190_v7, %v146_v6  ;;  %v325_v7 = vld [vmem:[%s1473_s3 + $0x38] sm:$0xff] }
  0xf2   :  { %v455_v8 = vmul.f32 2.0, %v325_v7 }
  0xf3   :  { %v268_v43 = vpop.permute.xlu1 %267  ;;  %v250_v17 = vadd.f32 %v242_v10, %v198_v11  ;;  %v454_v10 = vmul.f32 2.0, %v324_v9  ;;  %v323_v11 = vld [vmem:[%s1473_s3 + $0x28] sm:$0xff] }
  0xf4   :  { %v296_v18 = vmul.f32 %v1184_v47, %v268_v43  ;;  %v453_v12 = vmul.f32 2.0, %v323_v11  ;;  %v452_v43 = vmul.f32 2.0, %v322_v13  ;;  %v312_v11 = vld [vmem:[%s1472_s2 + $0x10] sm:$0xff] }
  0xf5   :  { %v302_v24 = vadd.f32 %v294_v34, %v250_v17 }
  0xf6   :  { %v304_v20 = vadd.f32 %v296_v18, %v252_v30 }
  0xf7   :  { %v264_v21 = vpop.permute.xlu1 %263  ;;  %v335_v31 = vsel %vm334_vm0, %v302_v24, 0.0 }
  0xf8   :  { %v295_v33 = vmul.f32 %v1184_v47, %v264_v21  ;;  %v341_v39 = vsel %vm334_vm0, %v304_v20, 0.0 }
  0xf9   :  { %342 = vadd.xlane.f32.xlu0 %v341_v39 }
  0xfa   :  { %v303_v26 = vadd.f32 %v295_v33, %v251_v23  ;;  %v317_v23 = vld [vmem:[%s1472_s2 + $0x38] sm:$0xff] }
  0xfc   :  { %v338_v29 = vsel %vm334_vm0, %v303_v26, 0.0 }
  0xfd   :  { %339 = vadd.xlane.f32.xlu1 %v338_v29  ;;  %336 = vadd.xlane.f32.xlu0 %v335_v31  ;;  %v315_v29 = vld [vmem:[%s1472_s2 + $0x28] sm:$0xff] }
 0x139   :  { %v358_v35 = vpop.xlane.xlu1 %357 }
 0x13a   :  { %v367_v37 = vmul.f32 0.125, %v358_v35 }
 0x13c   :  { %v1247_v49 = vsub.f32 %v1194_v63, %v367_v37 }
 0x13d   :  { %v352_v30 = vpop.xlane.xlu1 %351 }
 0x13e   :  { %v365_v38 = vmul.f32 0.125, %v352_v30  ;;  %v383_v47 = vmul.f32 %v1247_v49, %v1247_v49 }
 0x140   :  { %v1252_v40 = vsub.f32 %v1199_v3, %v365_v38  ;;  %v405_v16 = vsel %vm334_vm0, %v383_v47, 0.0  ;;  %v316_v38 = vld [vmem:[%s1472_s2 + $0x30] sm:$0xff] }
 0x141   :  { %406 = vadd.xlane.f32.xlu1 %v405_v16 }
 0x142   :  { %v381_v22 = vmul.f32 %v1252_v40, %v1252_v40 }
 0x144   :  { %v399_v41 = vsel %vm334_vm0, %v381_v22, 0.0  ;;  %v321_v22 = vld [vmem:[%s1473_s3 + $0x18] sm:$0xff] }
 0x145   :  { %400 = vadd.xlane.f32.xlu1 %v399_v41 }
 0x146   :  { %v355_v42 = vpop.xlane.xlu0 %354 }
 0x147   :  { %v366_v63 = vmul.f32 0.125, %v355_v42  ;;  %v451_v42 = vmul.f32 2.0, %v321_v22 }
 0x149   :  { %v1259_v44 = vsub.f32 %v1207_v15, %v366_v63  ;;  %v320_v63 = vld [vmem:[%s1473_s3 + $0x10] sm:$0xff] }
 0x14b   :  { %v382_v45 = vmul.f32 %v1259_v44, %v1259_v44 }
 0x14d   :  { %v402_v3 = vsel %vm334_vm0, %v382_v45, 0.0  ;;  %v450_v45 = vmul.f32 2.0, %v320_v63 }
 0x14e   :  { %403 = vadd.xlane.f32.xlu0 %v402_v3  ;;  %v319_v3 = vld [vmem:[%s1473_s3 + $0x8] sm:$0xff] }
 0x169   :  { %v349_v46 = vpop.xlane.xlu0 %348 }
 0x16a   :  { %v364_v48 = vmul.f32 0.125, %v349_v46  ;;  %v449_v46 = vmul.f32 2.0, %v319_v3 }
 0x16c   :  { %v1264_v50 = vsub.f32 %v306_v32, %v364_v48 }
 0x16e   :  { %v380_v36 = vmul.f32 %v1264_v50, %v1264_v50 }
 0x170   :  { %v396_v51 = vsel %vm334_vm0, %v380_v36, 0.0 }
 0x171   :  { %397 = vadd.xlane.f32.xlu0 %v396_v51 }
 0x178   :  { %v346_v52 = vpop.xlane.xlu1 %345 }
 0x179   :  { %v363_v53 = vmul.f32 0.125, %v346_v52 }
 0x17b   :  { %v1269_v15 = vsub.f32 %v305_v62, %v363_v53 }
 0x17d   :  { %v379_v54 = vmul.f32 %v1269_v15, %v1269_v15 }
 0x17f   :  { %v393_v55 = vsel %vm334_vm0, %v379_v54, 0.0  ;;  %v314_v54 = vld [vmem:[%s1472_s2 + $0x20] sm:$0xff] }
 0x180   :  { %394 = vadd.xlane.f32.xlu1 %v393_v55 }
 0x182   :  { %v343_v56 = vpop.xlane.xlu0 %342 }
 0x183   :  { %v362_v57 = vmul.f32 0.125, %v343_v56 }
 0x185   :  { %v1274_v32 = vsub.f32 %v304_v20, %v362_v57 }
 0x186   :  { %v340_v27 = vpop.xlane.xlu1 %339  ;;  %v337_v58 = vpop.xlane.xlu0 %336 }
 0x187   :  { %v361_v59 = vmul.f32 0.125, %v340_v27  ;;  %v360_v60 = vmul.f32 0.125, %v337_v58  ;;  %v378_v61 = vmul.f32 %v1274_v32, %v1274_v32 }
 0x189   :  { %v1278_v0 = vsub.f32 %v303_v26, %v361_v59  ;;  %v1280_v62 = vsub.f32 %v302_v24, %v360_v60  ;;  %v390_v1 = vsel %vm334_vm0, %v378_v61, 0.0 }
 0x18a   :  { %391 = vadd.xlane.f32.xlu0 %v390_v1 }
 0x18b   :  { %v377_v2 = vmul.f32 %v1278_v0, %v1278_v0  ;;  %v376_v4 = vmul.f32 %v1280_v62, %v1280_v62 }
 0x18d   :  { %v387_v5 = vsel %vm334_vm0, %v377_v2, 0.0  ;;  %v384_v6 = vsel %vm334_vm0, %v376_v4, 0.0 }
 0x18e   :  { %388 = vadd.xlane.f32.xlu1 %v387_v5  ;;  %385 = vadd.xlane.f32.xlu0 %v384_v6  ;;  %v313_v5 = vld [vmem:[%s1472_s2 + $0x18] sm:$0xff] }
 0x19f   :  { %541 = vperm.xlu1 %976, %v455_v8  }
 0x1a3   :  { %536 = vperm.xlu1 %976, %v454_v10  }
 0x1a7   :  { %531 = vperm.xlu1 %976, %v453_v12  }
 0x1ab   :  { %526 = vperm.xlu1 %976, %v452_v43   ;;  %v311_v43 = vld [vmem:[%s1472_s2 + $0x8] sm:$0xff] }
 0x1ca   :  { %v407_v17 = vpop.xlane.xlu1 %406 }
 0x1cb   :  { %v415_v14 = vmul.f32 0.125, %v407_v17 }
 0x1cd   :  { %v423_v34 = vadd.f32 1e-05, %v415_v14 }
 0x1ce   :  { %v401_v18 = vpop.xlane.xlu1 %400 }
 0x1cf   :  { %978 = vrsqrt.f32 %v423_v34  ;;  %v413_v19 = vmul.f32 0.125, %v401_v18  ;;  %v310_v34 = vld [vmem:[%s1472_s2] sm:$0xff] }
 0x1d1   :  { %v421_v20 = vadd.f32 1e-05, %v413_v19 }
 0x1d3   :  { %980 = vrsqrt.f32 %v421_v20 }
 0x1d7   :  { %v404_v21 = vpop.xlane.xlu0 %403 }
 0x1d8   :  { %v414_v33 = vmul.f32 0.125, %v404_v21 }
 0x1da   :  { %v422_v39 = vadd.f32 1e-05, %v414_v33  ;;  %v318_v33 = vld [vmem:[%s1473_s3] sm:$0xff] }
 0x1dc   :  { %v979_v24 = vpop.eup %978  ;;  %982 = vrsqrt.f32 %v422_v39 }
 0x1dd   :  { %v439_v26 = vmul.f32 %v979_v24, %v317_v23  ;;  %v448_v23 = vmul.f32 2.0, %v318_v33  ;;  %v576_v24 = vld [vmem:[%s1475_s5] sm:$0xff] }
 0x1de   :  { %918 = vmatprep.mubr.msk.f32.mxu0 %vm580_vm1, %v576_v24 }
 0x1df   :  { %v447_v31 = vmul.f32 2.0, %v439_v26  ;;  %v578_v26 = vld [vmem:[%s1475_s5 + $0x10] sm:$0xff] }
 0x1e0   :  { %v981_v35 = vpop.eup %980  ;;  %921 = vmatprep.mubr.msk.f32.mxu1 %vm580_vm1, %v578_v26 }
 0x1e1   :  { %493 = vperm.xlu1 %976, %v447_v31   ;;  %v437_v37 = vmul.f32 %v981_v35, %v315_v29 }
 0x1e3   :  { %v445_v30 = vmul.f32 2.0, %v437_v37 }
 0x1e5   :  { %483 = vperm.xlu1 %976, %v445_v30  }
 0x1e9   :  { %v983_v47 = vpop.eup %982 }
 0x1ea   :  { %v438_v16 = vmul.f32 %v983_v47, %v316_v38  ;;  %v333_v47 = vld [vmem:[%s1474_s4 + $0x38] sm:$0xff] }
 0x1eb   :  { %vm567_vm2 = vcmp.ge.u32.totalorder %v333_v47, 2147483648 }
 0x1ec   :  { %v446_v41 = vmul.f32 2.0, %v438_v16 }
 0x1ee   :  { %488 = vperm.xlu0 %977, %v446_v41  }
 0x1f2   :  { %521 = vperm.xlu0 %977, %v451_v42  }
 0x1f6   :  { %516 = vperm.xlu0 %977, %v450_v45  }
 0x1fa   :  { %v398_v48 = vpop.xlane.xlu0 %397  ;;  %511 = vperm.xlu0 %977, %v449_v46  }
 0x1fb   :  { %v412_v36 = vmul.f32 0.125, %v398_v48  ;;  %v331_v48 = vld [vmem:[%s1474_s4 + $0x28] sm:$0xff] }
 0x1fc   :  { %vm565_vm4 = vcmp.ge.u32.totalorder %v331_v48, 2147483648  ;;  %v682_v48 = vld [vmem:[%s1477_s7] sm:$0xff] }
 0x1fd   :  { %v420_v51 = vadd.f32 1e-05, %v412_v36 }
 0x1ff   :  { %984 = vrsqrt.f32 %v420_v51 }
 0x209   :  { %v395_v52 = vpop.xlane.xlu1 %394 }
 0x20a   :  { %v411_v53 = vmul.f32 0.125, %v395_v52  ;;  %v330_v52 = vld [vmem:[%s1474_s4 + $0x20] sm:$0xff] }
 0x20b   :  { %vm564_vm5 = vcmp.ge.u32.totalorder %v330_v52, 2147483648 }
 0x20c   :  { %v985_v55 = vpop.eup %984  ;;  %v419_v56 = vadd.f32 1e-05, %v411_v53 }
 0x20d   :  { %v436_v57 = vmul.f32 %v985_v55, %v314_v54 }
 0x20e   :  { %986 = vrsqrt.f32 %v419_v56 }
 0x20f   :  { %v444_v27 = vmul.f32 2.0, %v436_v57  ;;  %v329_v57 = vld [vmem:[%s1474_s4 + $0x18] sm:$0xff] }
 0x210   :  { %vm563_vm6 = vcmp.ge.u32.totalorder %v329_v57, 2147483648 }
 0x211   :  { %478 = vperm.xlu1 %976, %v444_v27  }
 0x213   :  { %v392_v58 = vpop.xlane.xlu0 %391 }
 0x214   :  { %v410_v59 = vmul.f32 0.125, %v392_v58 }
 0x216   :  { %v418_v60 = vadd.f32 1e-05, %v410_v59 }
 0x217   :  { %v389_v61 = vpop.xlane.xlu1 %388  ;;  %v386_v1 = vpop.xlane.xlu0 %385 }
 0x218   :  { %988 = vrsqrt.f32 %v418_v60  ;;  %v409_v2 = vmul.f32 0.125, %v389_v61  ;;  %v408_v4 = vmul.f32 0.125, %v386_v1 }
 0x21a   :  { %v417_v6 = vadd.f32 1e-05, %v409_v2  ;;  %v416_v7 = vadd.f32 1e-05, %v408_v4 }
 0x21b   :  { %v987_v8 = vpop.eup %986  ;;  %v542_v29 = vpop.permute.xlu1 %541 }
 0x21c   :  { %990 = vrsqrt.f32 %v417_v6  ;;  %v435_v9 = vmul.f32 %v987_v8, %v313_v5  ;;  %v327_v6 = vld [vmem:[%s1474_s4 + $0x8] sm:$0xff] }
 0x21d   :  { %992 = vrsqrt.f32 %v416_v7  ;;  %vm561_vm8 = vcmp.ge.u32.totalorder %v327_v6, 2147483648  ;;  %v681_v6 = vld [vmem:[%s1476_s6 + $0x18] sm:$0xff] }
 0x21e   :  { %v443_v10 = vmul.f32 2.0, %v435_v9 }
 0x21f   :  { %v537_v31 = vpop.permute.xlu1 %536 }
 0x220   :  { %473 = vperm.xlu1 %976, %v443_v10  }
 0x223   :  { %v532_v35 = vpop.permute.xlu1 %531 }
 0x225   :  { %v989_v12 = vpop.eup %988 }
 0x226   :  { %v434_v13 = vmul.f32 %v989_v12, %v312_v11 }
 0x227   :  { %v527_v37 = vpop.permute.xlu1 %526 }
 0x228   :  { %v442_v17 = vmul.f32 2.0, %v434_v13 }
 0x229   :  { %v991_v14 = vpop.eup %990 }
 0x22a   :  { %v993_v18 = vpop.eup %992  ;;  %468 = vperm.xlu1 %976, %v442_v17   ;;  %v433_v19 = vmul.f32 %v991_v14, %v311_v43  ;;  %v577_v43 = vld [vmem:[%s1475_s5 + $0x8] sm:$0xff] }
 0x22b   :  { %v432_v21 = vmul.f32 %v993_v18, %v310_v34 }
 0x22c   :  { %v441_v20 = vmul.f32 2.0, %v433_v19 }
 0x22d   :  { %v440_v39 = vmul.f32 2.0, %v432_v21 }
 0x22e   :  { %463 = vperm.xlu1 %976, %v441_v20  }
 0x232   :  { %458 = vperm.xlu1 %976, %v440_v39  }
 0x236   :  { %506 = vperm.xlu1 %976, %v448_v23  }
 0x25c   :  { %v494_v30 = vpop.permute.xlu1 %493 }
 0x25d   :  { %v503_v38 = vmul.f32 %v494_v30, %v1247_v49  ;;  %v332_v49 = vld [vmem:[%s1474_s4 + $0x30] sm:$0xff] }
 0x25e   :  { %vm566_vm3 = vcmp.ge.u32.totalorder %v332_v49, 2147483648 }
 0x25f   :  { %v551_v16 = vadd.f32 %v542_v29, %v503_v38 }
 0x260   :  { %v484_v41 = vpop.permute.xlu1 %483 }
 0x261   :  { %v559_v22 = vmax.f32 %v551_v16, 0.0  ;;  %v501_v42 = vmul.f32 %v484_v41, %v1252_v40 }
 0x263   :  { %902 = vmatprep.subr.msk.mxu0 %vm567_vm2, %v559_v22  ;;  %924 = vmatprep.subr.msk.mxu1 %vm567_vm2, %v559_v22  ;;  %v549_v3 = vadd.f32 %v532_v35, %v501_v42 }
 0x264   :  { %903 = vmatpush3.msk.msra.mxu0 %vm567_vm2, %v559_v22  ;;  %932 = vmatpush3.msk.msra.mxu1 %vm567_vm2, %v559_v22 }
 0x265   :  { %v557_v51 = vmax.f32 %v549_v3, 0.0 }
 0x269   :  { %v489_v63 = vpop.permute.xlu0 %488 }
 0x26a   :  { %v502_v45 = vmul.f32 %v489_v63, %v1259_v44 }
 0x26c   :  { %v550_v46 = vadd.f32 %v537_v31, %v502_v45 }
 0x26d   :  { %v522_v27 = vpop.permute.xlu0 %521 }
 0x26e   :  { %v558_v36 = vmax.f32 %v550_v46, 0.0 }
 0x270   :  { %904 = vmatprep.subr.msk.mxu0 %vm566_vm3, %v558_v36  ;;  %925 = vmatprep.subr.msk.mxu1 %vm566_vm3, %v558_v36 }
 0x271   :  { %905 = vmatpush3.msk.msra.mxu0 %vm566_vm3, %v558_v36  ;;  %933 = vmatpush3.msk.msra.mxu1 %vm566_vm3, %v558_v36  ;;  %v517_v59 = vpop.permute.xlu0 %516  ;;  %v746_v36 = vmul.f32 2.0, %v682_v48 }
 0x272   :  { %906 = vmatprep.subr.msk.mxu0 %vm565_vm4, %v557_v51  ;;  %926 = vmatprep.subr.msk.mxu1 %vm565_vm4, %v557_v51 }
 0x273   :  { %907 = vmatpush3.msk.msra.mxu0 %vm565_vm4, %v557_v51  ;;  %934 = vmatpush3.msk.msra.mxu1 %vm565_vm4, %v557_v51  ;;  %v683_v51 = vld [vmem:[%s1477_s7 + $0x8] sm:$0xff] }
 0x275   :  { %v512_v7 = vpop.permute.xlu0 %511 }
 0x28c   :  { %v479_v40 = vpop.permute.xlu1 %478 }
 0x28d   :  { %v500_v44 = vmul.f32 %v479_v40, %v1264_v50  ;;  %v747_v40 = vmul.f32 2.0, %v683_v51 }
 0x28f   :  { %v548_v53 = vadd.f32 %v527_v37, %v500_v44 }
 0x291   :  { %v556_v54 = vmax.f32 %v548_v53, 0.0 }
 0x293   :  { %908 = vmatprep.subr.msk.mxu0 %vm564_vm5, %v556_v54  ;;  %927 = vmatprep.subr.msk.mxu1 %vm564_vm5, %v556_v54 }
 0x294   :  { %909 = vmatpush3.msk.msra.mxu0 %vm564_vm5, %v556_v54  ;;  %935 = vmatpush3.msk.msra.mxu1 %vm564_vm5, %v556_v54 }
 0x29b   :  { %v474_v55 = vpop.permute.xlu1 %473 }
 0x29c   :  { %v499_v56 = vmul.f32 %v474_v55, %v1269_v15  ;;  %v328_v15 = vld [vmem:[%s1474_s4 + $0x10] sm:$0xff] }
 0x29d   :  { %vm562_vm7 = vcmp.ge.u32.totalorder %v328_v15, 2147483648 }
 0x29e   :  { %v547_v50 = vadd.f32 %v522_v27, %v499_v56 }
 0x2a0   :  { %v555_v58 = vmax.f32 %v547_v50, 0.0 }
 0x2a2   :  { %910 = vmatprep.subr.msk.mxu0 %vm563_vm6, %v555_v58  ;;  %928 = vmatprep.subr.msk.mxu1 %vm563_vm6, %v555_v58 }
 0x2a3   :  { %911 = vmatpush3.msk.msra.mxu0 %vm563_vm6, %v555_v58  ;;  %936 = vmatpush3.msk.msra.mxu1 %vm563_vm6, %v555_v58 }
 0x2a5   :  { %v469_v60 = vpop.permute.xlu1 %468 }
 0x2a6   :  { %v498_v61 = vmul.f32 %v469_v60, %v1274_v32 }
 0x2a8   :  { %v546_v1 = vadd.f32 %v517_v59, %v498_v61  ;;  %v679_v61 = vld [vmem:[%s1476_s6 + $0x8] sm:$0xff] }
 0x2a9   :  { %v464_v2 = vpop.permute.xlu1 %463 }
 0x2aa   :  { %v554_v4 = vmax.f32 %v546_v1, 0.0  ;;  %v497_v5 = vmul.f32 %v464_v2, %v1278_v0  ;;  %v326_v0 = vld [vmem:[%s1474_s4] sm:$0xff]  ;;  %v684_v2 = vld [vmem:[%s1477_s7 + $0x10] sm:$0xff] }
 0x2ab   :  { %vm560_vm9 = vcmp.ge.u32.totalorder %v326_v0, 2147483648 }
 0x2ac   :  { %v545_v8 = vadd.f32 %v512_v7, %v497_v5  ;;  %912 = vmatprep.subr.msk.mxu0 %vm562_vm7, %v554_v4  ;;  %929 = vmatprep.subr.msk.mxu1 %vm562_vm7, %v554_v4  ;;  %v748_v5 = vmul.f32 2.0, %v684_v2 }
 0x2ad   :  { %v459_v9 = vpop.permute.xlu1 %458  ;;  %913 = vmatpush3.msk.msra.mxu0 %vm562_vm7, %v554_v4  ;;  %937 = vmatpush3.msk.msra.mxu1 %vm562_vm7, %v554_v4 }
 0x2ae   :  { %v553_v32 = vmax.f32 %v545_v8, 0.0  ;;  %v496_v10 = vmul.f32 %v459_v9, %v1280_v62  ;;  %v579_v62 = vld [vmem:[%s1475_s5 + $0x18] sm:$0xff]  ;;  %v810_v9 = vld [vmem:[%s1479_s9] sm:$0xff] }
 0x2b0   :  { %914 = vmatprep.subr.msk.mxu0 %vm561_vm8, %v553_v32  ;;  %930 = vmatprep.subr.msk.mxu1 %vm561_vm8, %v553_v32 }
 0x2b1   :  { %v507_v11 = vpop.permute.xlu1 %506  ;;  %915 = vmatpush3.msk.msra.mxu0 %vm561_vm8, %v553_v32  ;;  %938 = vmatpush3.msk.msra.mxu1 %vm561_vm8, %v553_v32  ;;  %v678_v32 = vld [vmem:[%s1476_s6] sm:$0xff] }
 0x2b2   :  { %v544_v12 = vadd.f32 %v507_v11, %v496_v10 }
 0x2b4   :  { %v552_v13 = vmax.f32 %v544_v12, 0.0 }
 0x2b6   :  { %916 = vmatprep.subr.msk.mxu0 %vm560_vm9, %v552_v13  ;;  %931 = vmatprep.subr.msk.mxu1 %vm560_vm9, %v552_v13 }
 0x2b7   :  { %917 = vmatpush3.msk.msra.mxu0 %vm560_vm9, %v552_v13  ;;  %939 = vmatpush3.msk.msra.mxu1 %vm560_vm9, %v552_v13  ;;  %v812_v13 = vld [vmem:[%s1479_s9 + $0x10] sm:$0xff] }
 0x2b8   :  { %919 = vmatmul.mubr.msk.f32.vlgmr.msra.gmra.mxu0 %vm580_vm1, %v577_v43  ;;  %922 = vmatmul.mubr.msk.f32.vlgmr.msra.gmra.mxu1 %vm580_vm1, %v579_v62  ;;  %v680_v43 = vld [vmem:[%s1476_s6 + $0x10] sm:$0xff] }
 0x378   :  { %v920_v17 = vpop.f32.mrf.mxu0  ;;  %v923_v14 = vpop.f32.mrf.mxu1 }
 0x379   :  { %v693_v34 = vsel %vm334_vm0, %v920_v17, 0.0  ;;  %v699_v33 = vsel %vm334_vm0, %v923_v14, 0.0 }
 0x37a   :  { %694 = vadd.xlane.f32.xlu1 %v693_v34  ;;  %v659_v18 = vpop.f32.mrf.mxu0  ;;  %v669_v20 = vpop.f32.mrf.mxu1  ;;  %v685_v34 = vld [vmem:[%s1477_s7 + $0x18] sm:$0xff] }
 0x37b   :  { %v690_v19 = vsel %vm334_vm0, %v659_v18, 0.0  ;;  %v696_v21 = vsel %vm334_vm0, %v669_v20, 0.0 }
 0x37c   :  { %691 = vadd.xlane.f32.xlu0 %v690_v19  ;;  %v749_v19 = vmul.f32 2.0, %v685_v34 }
 0x380   :  { %697 = vadd.xlane.f32.xlu0 %v696_v21  ;;  %v813_v21 = vld [vmem:[%s1479_s9 + $0x18] sm:$0xff] }
 0x384   :  { %700 = vadd.xlane.f32.xlu0 %v699_v33 }
 0x403   :  { %v695_v39 = vpop.xlane.xlu1 %694 }
 0x404   :  { %v703_v23 = vmul.f32 0.125, %v695_v39 }
 0x405   :  { %v692_v24 = vpop.xlane.xlu0 %691 }
 0x406   :  { %v1389_v26 = vsub.f32 %v920_v17, %v703_v23  ;;  %v702_v29 = vmul.f32 0.125, %v692_v24 }
 0x408   :  { %v1391_v31 = vsub.f32 %v659_v18, %v702_v29  ;;  %v711_v35 = vmul.f32 %v1389_v26, %v1389_v26 }
 0x409   :  { %v698_v37 = vpop.xlane.xlu0 %697 }
 0x40a   :  { %v704_v30 = vmul.f32 0.125, %v698_v37  ;;  %v717_v38 = vsel %vm334_vm0, %v711_v35, 0.0  ;;  %v710_v47 = vmul.f32 %v1391_v31, %v1391_v31 }
 0x40b   :  { %718 = vadd.xlane.f32.xlu0 %v717_v38  ;;  %v686_v38 = vld [vmem:[%s1478_s8] sm:$0xff] }
 0x40c   :  { %v1398_v16 = vsub.f32 %v669_v20, %v704_v30  ;;  %v714_v22 = vsel %vm334_vm0, %v710_v47, 0.0  ;;  %v811_v20 = vld [vmem:[%s1479_s9 + $0x8] sm:$0xff]  ;;  %vm802_vm10 = vcmp.ge.u32.totalorder %v686_v38, 2147483648 }
 0x40d   :  { %715 = vadd.xlane.f32.xlu1 %v714_v22  ;;  %v701_v41 = vpop.xlane.xlu0 %700 }
 0x40e   :  { %v705_v42 = vmul.f32 0.125, %v701_v41  ;;  %v712_v63 = vmul.f32 %v1398_v16, %v1398_v16 }
 0x410   :  { %v1403_v45 = vsub.f32 %v923_v14, %v705_v42  ;;  %v720_v49 = vsel %vm334_vm0, %v712_v63, 0.0  ;;  %v851_v14 = vld [vmem:[#allocation2] sm:$0x1]  ;;  %v688_v63 = vld [vmem:[%s1478_s8 + $0x10] sm:$0xff] }
 0x411   :  { %721 = vadd.xlane.f32.xlu1 %v720_v49  ;;  %vm804_vm11 = vcmp.ge.u32.totalorder %v688_v63, 2147483648 }
 0x412   :  { %v713_v3 = vmul.f32 %v1403_v45, %v1403_v45 }
 0x414   :  { %v723_v46 = vsel %vm334_vm0, %v713_v3, 0.0 }
 0x415   :  { %724 = vadd.xlane.f32.xlu0 %v723_v46 }
 0x422   :  { %776 = vperm.xlu1 %976, %v746_v36  }
 0x42b   :  { %781 = vperm.xlu0 %977, %v747_v40  }
 0x494   :  { %v719_v44 = vpop.xlane.xlu0 %718 }
 0x495   :  { %v727_v52 = vmul.f32 0.125, %v719_v44 }
 0x496   :  { %v716_v53 = vpop.xlane.xlu1 %715 }
 0x497   :  { %v731_v54 = vadd.f32 1e-05, %v727_v52  ;;  %v726_v55 = vmul.f32 0.125, %v716_v53  ;;  %v689_v52 = vld [vmem:[%s1478_s8 + $0x18] sm:$0xff] }
 0x498   :  { %vm805_vm13 = vcmp.ge.u32.totalorder %v689_v52, 2147483648 }
 0x499   :  { %994 = vrsqrt.f32 %v731_v54  ;;  %v730_v57 = vadd.f32 1e-05, %v726_v55 }
 0x49a   :  { %v722_v56 = vpop.xlane.xlu1 %721 }
 0x49b   :  { %v728_v50 = vmul.f32 0.125, %v722_v56  ;;  %996 = vrsqrt.f32 %v730_v57 }
 0x49d   :  { %v732_v60 = vadd.f32 1e-05, %v728_v50 }
 0x49e   :  { %v725_v27 = vpop.xlane.xlu0 %724  ;;  %v777_v39 = vpop.permute.xlu1 %776 }
 0x49f   :  { %v729_v58 = vmul.f32 0.125, %v725_v27 }
 0x4a1   :  { %v733_v59 = vadd.f32 1e-05, %v729_v58 }
 0x4a3   :  { %998 = vrsqrt.f32 %v733_v59 }
 0x4a4   :  { %1000 = vrsqrt.f32 %v732_v60 }
 0x4a6   :  { %v995_v15 = vpop.eup %994  ;;  %v782_v33 = vpop.permute.xlu0 %781 }
 0x4a7   :  { %v739_v1 = vmul.f32 %v995_v15, %v679_v61 }
 0x4a8   :  { %v997_v7 = vpop.eup %996 }
 0x4a9   :  { %v743_v4 = vmul.f32 2.0, %v739_v1  ;;  %v738_v11 = vmul.f32 %v997_v7, %v678_v32 }
 0x4ab   :  { %757 = vperm.xlu0 %977, %v743_v4   ;;  %v742_v62 = vmul.f32 2.0, %v738_v11 }
 0x4af   :  { %786 = vperm.xlu0 %977, %v748_v5  }
 0x4b0   :  { %v999_v8 = vpop.eup %998 }
 0x4b1   :  { %v741_v10 = vmul.f32 %v999_v8, %v681_v6  ;;  %v1001_v12 = vpop.eup %1000 }
 0x4b2   :  { %v740_v17 = vmul.f32 %v1001_v12, %v680_v43 }
 0x4b3   :  { %816 = vperm.xlu0 %977, %v810_v9   ;;  %v745_v0 = vmul.f32 2.0, %v741_v10 }
 0x4b4   :  { %v744_v18 = vmul.f32 2.0, %v740_v17 }
 0x4b5   :  { %767 = vperm.xlu1 %976, %v745_v0  }
 0x4b7   :  { %826 = vperm.xlu0 %977, %v812_v13  }
 0x4b9   :  { %752 = vperm.xlu1 %976, %v742_v62  }
 0x4bb   :  { %854 = vperm.xlu0 %977, %v851_v14  }
 0x4bd   :  { %762 = vperm.xlu1 %976, %v744_v18  }
 0x4c1   :  { %791 = vperm.xlu1 %976, %v749_v19  }
 0x4c5   :  { %821 = vperm.xlu1 %976, %v811_v20  }
 0x4c9   :  { %831 = vperm.xlu1 %976, %v813_v21  }
 0x526   :  { %v758_v23 = vpop.permute.xlu0 %757 }
 0x527   :  { %v771_v29 = vmul.f32 %v758_v23, %v1389_v26 }
 0x529   :  { %v795_v22 = vadd.f32 %v782_v33, %v771_v29 }
 0x52a   :  { %v787_v35 = vpop.permute.xlu0 %786 }
 0x52b   :  { %v799_v48 = vmax.f32 %v795_v22, 0.0 }
 0x52e   :  { %v817_v26 = vpop.permute.xlu0 %816 }
 0x530   :  { %v768_v24 = vpop.permute.xlu1 %767 }
 0x531   :  { %v773_v3 = vmul.f32 %v768_v24, %v1403_v45 }
 0x532   :  { %v827_v54 = vpop.permute.xlu0 %826 }
 0x534   :  { %v753_v37 = vpop.permute.xlu1 %752 }
 0x535   :  { %v770_v30 = vmul.f32 %v753_v37, %v1391_v31  ;;  %v687_v31 = vld [vmem:[%s1478_s8 + $0x8] sm:$0xff]  ;;  %s1029_s8 = smov [#allocation3]  }
 0x536   :  { %vm803_vm12 = vcmp.ge.u32.totalorder %v687_v31, 2147483648  ;;  %v855_v32 = vpop.permute.xlu0 %854  ;;  %s870_s25 = sshll.u32 %s1029_s8, 4  ;;  %s871_s25 = int_to_ptr.vmem [resolvable:$true] %s870_s25 }
 0x537   :  { %v794_v47 = vadd.f32 %v777_v39, %v770_v30  ;;  %v807_v57 = vsel %vm803_vm12, %v799_v48, 0.0  ;;  %v860_v0 = vrot.slane %v855_v32, %v92_v28  ;;  %s1002_s2 = scalar_lea.vmem %s871_s25, 16  ;;  %s1006_s26 = scalar_lea.vmem %s871_s25, 32 }
 0x538   :  { %v763_v41 = vpop.permute.xlu1 %762  ;;  %p1003_p0 = scmp.ne.s32.totalorder %s871_s25, %s1002_s2  ;;  %p1007_p1 = scmp.lt.s32.totalorder %s871_s25, %s871_s25 }
 0x539   :  { %v798_v42 = vmax.f32 %v794_v47, 0.0  ;;  %v772_v49 = vmul.f32 %v763_v41, %v1398_v16  ;;  %p1008_p2 = scmp.lt.s32.totalorder %s1006_s26, %s1002_s2 }
 0x53b   :  { %v796_v46 = vadd.f32 %v787_v35, %v772_v49  ;;  %v806_v36 = vsel %vm802_vm10, %v798_v42, 0.0  ;;  %p1009_p3 = por %p1008_p2, %p1007_p1 }
 0x53c   :  { %v792_v51 = vpop.permute.xlu1 %791  ;;  %v834_v16 = vmul.f32 %v817_v26, %v806_v36 }
 0x53d   :  { %v800_v40 = vmax.f32 %v796_v46, 0.0  ;;  %v797_v44 = vadd.f32 %v792_v51, %v773_v3  ;;  %p1010_p4 = pnand %p1009_p3, %p1003_p0 }
 0x53e   :  { %v838_v50 = vsel %vm334_vm0, %v834_v16, 0.0 }
 0x53f   :  { %v808_v53 = vsel %vm804_vm11, %v800_v40, 0.0  ;;  %v801_v55 = vmax.f32 %v797_v44, 0.0 }
 0x540   :  { %v822_v56 = vpop.permute.xlu1 %821  ;;  %v836_v27 = vmul.f32 %v827_v54, %v808_v53 }
 0x541   :  { %v835_v45 = vmul.f32 %v822_v56, %v807_v57  ;;  %v809_v60 = vsel %vm805_vm13, %v801_v55, 0.0 }
 0x542   :  { %v841_v1 = vsel %vm334_vm0, %v836_v27, 0.0 }
 0x543   :  { %v839_v58 = vsel %vm334_vm0, %v835_v45, 0.0 }
 0x544   :  { %v840_v59 = vadd.f32 %v839_v58, %v838_v50  ;;  %v832_v61 = vpop.permute.xlu1 %831 }
 0x545   :  { %v837_v15 = vmul.f32 %v832_v61, %v809_v60 }
 0x546   :  { %v842_v2 = vadd.f32 %v841_v1, %v840_v59 }
 0x547   :  { %v843_v4 = vsel %vm334_vm0, %v837_v15, 0.0 }
 0x548   :  { %v844_v5 = vadd.f32 %v843_v4, %v842_v2 }
 0x54a   :  { %v845_v6 = vrot.slane %v844_v5, 4 }
 0x54c   :  { %v846_v7 = vadd.f32 %v845_v6, %v844_v5 }
 0x54e   :  { %v847_v8 = vrot.slane %v846_v7, 2 }
 0x550   :  { %v848_v9 = vadd.f32 %v847_v8, %v846_v7 }
 0x552   :  { %v849_v10 = vrot.slane %v848_v9, 1 }
 0x554   :  { %v850_v11 = vadd.f32 %v849_v10, %v848_v9 }
 0x556   :  { %v861_v12 = vadd.f32 %v860_v0, %v850_v11 }
 0x558   :  { %863 = vst.msk [vmem:[#allocation3] sm:$0x1] %vm862_vm14, %v861_v12 }
 0x559   :  { %1013 = shalt.err (!%p1010_p4)
}
 0x55a   :  { %873 = dma.vmem_to_hbm [thread:$0]  %s871_s25, 16, %s1481_s11, [#allocation4]  }
 0x55b   :  { %1022 = dma.done.wait [#allocation4], 16  }
 0x55c   :  { %1023 = vsyncadd [#allocation4], 4294967280 }
 0x55d   :  { %877 = vsyncpa [#allocation4], 1 }

</bundles_post_ra>
